<compile_context>
chip_gen: v7x
topology: tpu7x:2x2x1
jax: 0.10.0
libtpu: 0.0.40
codegen_flags: <defaults>
</compile_context>

<pallas_src>
import functools

import jax
import jax.numpy as jnp
import numpy as np
from jax.experimental import pallas as pl
from jax.experimental.pallas import tpu as pltpu

_SUBLANE = 8


def _round_up(x, m):
    return ((x + m - 1) // m) * m


def _focal_loss_kernel(logits_ref, labels_ref, ag_ref, out_ref, *, n_rows):
    x = logits_ref[...].astype(jnp.float32)        # (TN, C) upcast in-kernel
    labels = labels_ref[...]                       # (TN, 1) int32
    ag = ag_ref[...]                               # (TN, 2) f32 = [alpha_t, gamma_t]
    alpha_t = ag[:, 0:1]
    gamma_t = ag[:, 1:2]
    tn, c = x.shape

    # Fused log-softmax over the class dim (only O(N*C) transcendental is exp).
    m = jnp.max(x, axis=1, keepdims=True)          # (TN, 1)
    xm = x - m
    e = jnp.exp(xm)
    sum_e = jnp.sum(e, axis=1, keepdims=True)      # (TN, 1)

    # True-class (x - m) via one masked sum; the (1, C) iota broadcasts in the
    # compare so no (TN, C) int32 temporary is materialized.
    class_idx = jax.lax.broadcasted_iota(jnp.int32, (1, c), 1)
    xm_c = jnp.sum(jnp.where(class_idx == labels, xm, 0.0),
                   axis=1, keepdims=True)          # (TN, 1)

    log_p_c = xm_c - jnp.log(sum_e)                # log softmax of the true class
    p_c = jnp.exp(log_p_c)
    log_prob = jnp.log(p_c + 1e-8)                 # PyTorch's log(softmax + 1e-8)

    # (1 - p)^gamma as exp(gamma * log(.)); clamp so log(0) never yields NaN/Inf.
    one_minus = jnp.maximum(1.0 - p_c, 1e-30)
    focal_weight = alpha_t * jnp.exp(gamma_t * jnp.log(one_minus))
    loss = -focal_weight * log_prob                # (TN, 1) per-row loss

    # Mask rows past the true batch size (boundary blocks read undefined rows).
    row_idx = pl.program_id(0) * tn + jax.lax.broadcasted_iota(jnp.int32, (tn, 1), 0)
    out_ref[...] = jnp.where(row_idx < n_rows, loss, 0.0)


@functools.partial(jax.jit, static_argnames=("block_n",))
def focal_loss(y_pred, y_true, alpha, gamma, *, block_n=None):
    """Mean focal loss. y_pred: (N, C) logits (f32 or bf16); y_true: (N,) int
    labels; alpha, gamma: (C,) per-class vectors."""
    N, C = y_pred.shape
    labels = y_true.astype(jnp.int32)

    # O(N) per-sample gathers done once in the wrapper, packed into one side
    # input so each grid step issues a single small DMA instead of three.
    ag = jnp.stack(
        [alpha.astype(jnp.float32)[labels], gamma.astype(jnp.float32)[labels]],
        axis=1)                                    # (N, 2)
    labels2d = labels.reshape(N, 1)                # (N, 1)

    itemsize = jnp.dtype(y_pred.dtype).itemsize
    mult = 16 if itemsize < 4 else _SUBLANE        # bf16 sublane tile is (16, 128)

    # Row tile: ~4 MiB of f32-equivalent logits per block; with ~4x f32
    # temporaries + double-buffered inputs this stays well under the 48 MiB
    # VMEM request below on every generation (v7x has 64 MiB physical).
    if block_n is None:
        rows_for_vmem = (4 * 1024 * 1024) // max(1, C * 4)
        block_n = max(mult, (rows_for_vmem // mult) * mult)
    tn = max(mult, (int(block_n) // mult) * mult)

    n_round = _round_up(N, mult)
    if tn >= n_round:
        if n_round >= 4 * mult:
            # Split into >= 2 blocks so both v7x TensorCores get work.
            tn = _round_up(-(-N // 2), mult)
        else:
            tn = n_round
    grid_n = -(-N // tn)

    x = y_pred
    if grid_n == 1 and tn > N:
        # Tiny-batch case only (N < 4*mult rows): pad a handful of rows so the
        # single block does not exceed the array extent. Large N never takes
        # this path, so the big logits tensor is never copied.
        pad = tn - N
        x = jnp.pad(x, ((0, pad), (0, 0)))
        labels2d = jnp.pad(labels2d, ((0, pad), (0, 0)))
        ag = jnp.pad(ag, ((0, pad), (0, 0)))

    load_block = tn * C * itemsize                 # logits block, native dtype
    f32_block = tn * C * 4                         # in-kernel f32 temporaries
    vmem_bytes = 2 * load_block + 4 * f32_block + 2 * tn * 16 + (2 << 20)
    params = pltpu.CompilerParams(
        dimension_semantics=("parallel",),
        vmem_limit_bytes=int(min(max(vmem_bytes, 16 << 20), 48 << 20)),
    )
    cost = pl.CostEstimate(
        flops=6 * N * C,
        transcendentals=N * C + 4 * N,
        bytes_accessed=N * C * itemsize + 12 * N + 4 * grid_n * tn,
    )

    per_row = pl.pallas_call(
        functools.partial(_focal_loss_kernel, n_rows=N),
        out_shape=jax.ShapeDtypeStruct((grid_n * tn, 1), jnp.float32),
        grid_spec=pltpu.PrefetchScalarGridSpec(
            num_scalar_prefetch=0,
            grid=(grid_n,),
            in_specs=[
                pl.BlockSpec((tn, C), lambda i: (i, 0)),   # logits, native dtype
                pl.BlockSpec((tn, 1), lambda i: (i, 0)),   # labels
                pl.BlockSpec((tn, 2), lambda i: (i, 0)),   # [alpha_t, gamma_t]
            ],
            out_specs=pl.BlockSpec((tn, 1), lambda i: (i, 0)),
        ),
        compiler_params=params,
        cost_estimate=cost,
    )(x, labels2d, ag)

    # Rows >= N were zeroed in-kernel; divide by the true batch size.
    return jnp.sum(per_row) / N


def _compute_alpha_from_counts(label_counts):
    """Mirror of FocalLoss._compute_alpha, from synthetic class counts."""
    counts = np.asarray(label_counts, dtype=np.float64)
    total = counts.sum()
    alpha = 1.0 - counts / total
    alpha = alpha / alpha.sum()
    max_alpha = alpha.max()
    if max_alpha < 0.2:
        alpha *= 5
    elif max_alpha < 0.3:
        alpha *= 3
    elif max_alpha < 0.5:
        alpha *= 2
    return jnp.asarray(alpha, dtype=jnp.float32)


def _focal_loss_ref(y_pred, y_true, alpha, gamma):
    """Pure-JAX reference of the PyTorch forward."""
    p = jax.nn.softmax(y_pred.astype(jnp.float32), axis=1)
    p_c = jnp.take_along_axis(p, y_true[:, None], axis=1)[:, 0]
    a_t = alpha[y_true]
    g_t = gamma[y_true]
    return jnp.mean(-a_t * (1.0 - p_c) ** g_t * jnp.log(p_c + 1e-8))


if __name__ == "__main__":
    key = jax.random.PRNGKey(0)
    k1, k2, k3, k4 = jax.random.split(key, 4)

    # --- Test 1: nominal small config (f32 logits), batch=8, classes=4. ---
    N, C = 8, 4
    # TODO(synk): the original module derives alpha from a CSV via pandas;
    # synthesized here from fixed class counts.
    label_counts = [50, 30, 15, 5]
    alpha = _compute_alpha_from_counts(label_counts)                 # (C,)
    gamma_weights = {0: 2.0, 1: 1.5, 2: 1.0, 3: 0.5}
    gamma = jnp.asarray([gamma_weights.get(i, 1.0) for i in range(C)],
                        dtype=jnp.float32)                           # (C,)

    y_pred = jax.random.normal(k1, (N, C), dtype=jnp.float32)        # logits
    y_true = jax.random.randint(k2, (N,), 0, C, dtype=jnp.int32)

    loss = focal_loss(y_pred, y_true, alpha, gamma)
    jax.block_until_ready(loss)
    ref = _focal_loss_ref(y_pred, y_true, alpha, gamma)
    assert jnp.allclose(loss, ref, rtol=1e-5, atol=1e-6), (loss, ref)

    # --- Test 2: bf16 logits, N not a multiple of the row tile (exercises the
    #     boundary block + in-kernel row mask), C not a multiple of 128. ---
    N2, C2 = 200, 10
    alpha2 = _compute_alpha_from_counts(list(range(5, 5 + C2)))
    gamma2 = jnp.linspace(0.5, 2.5, C2, dtype=jnp.float32)
    y_pred2 = jax.random.normal(k3, (N2, C2), dtype=jnp.float32).astype(jnp.bfloat16)
    y_true2 = jax.random.randint(k4, (N2,), 0, C2, dtype=jnp.int32)

    loss2 = focal_loss(y_pred2, y_true2, alpha2, gamma2)
    jax.block_until_ready(loss2)
    ref2 = _focal_loss_ref(y_pred2, y_true2, alpha2, gamma2)
    assert jnp.allclose(loss2, ref2, rtol=1e-4, atol=1e-5), (loss2, ref2)

    print("KERNEL_OK")
</pallas_src>

<mosaic_0001>
module attributes {stable_mosaic.version = 11 : i64} {
  func.func @_focal_loss_kernel(%arg0: i32, %arg1: memref<8x4xf32, #tpu.memory_space<vmem>>, %arg2: memref<8x1xi32, #tpu.memory_space<vmem>>, %arg3: memref<8x2xf32, #tpu.memory_space<vmem>>, %arg4: memref<8x1xf32, #tpu.memory_space<vmem>>) attributes {dimension_semantics = [#tpu.dimension_semantics<parallel>], iteration_bounds = array<i64: 1>, scalar_prefetch = 0 : i64, scratch_operands = 0 : i64, tpu.core_type = #tpu.core_type<tc>, window_params = [{transform_indices = @transform_0, window_bounds = array<i64: 8, 4>}, {transform_indices = @transform_1, window_bounds = array<i64: 8, 1>}, {transform_indices = @transform_2, window_bounds = array<i64: 8, 2>}, {transform_indices = @transform_3, window_bounds = array<i64: 8, 1>}]} {
    %c0 = arith.constant 0 : index
    %c0_0 = arith.constant 0 : index
    %0 = vector.load %arg1[%c0, %c0_0] : memref<8x4xf32, #tpu.memory_space<vmem>>, vector<8x4xf32>
    %c0_1 = arith.constant 0 : index
    %c0_2 = arith.constant 0 : index
    %1 = vector.load %arg2[%c0_1, %c0_2] : memref<8x1xi32, #tpu.memory_space<vmem>>, vector<8x1xi32>
    %c0_3 = arith.constant 0 : index
    %c0_4 = arith.constant 0 : index
    %2 = vector.load %arg3[%c0_3, %c0_4] : memref<8x2xf32, #tpu.memory_space<vmem>>, vector<8x2xf32>
    %3 = vector.extract_strided_slice %2 {offsets = [0, 0], sizes = [8, 1], strides = [1, 1]} : vector<8x2xf32> to vector<8x1xf32>
    %4 = vector.extract_strided_slice %2 {offsets = [0, 1], sizes = [8, 1], strides = [1, 1]} : vector<8x2xf32> to vector<8x1xf32>
    %cst = arith.constant dense<0xFF800000> : vector<8xf32>
    %5 = vector.multi_reduction <maximumf>, %0, %cst [1] : vector<8x4xf32> to vector<8xf32>
    %6 = vector.shape_cast %5 : vector<8xf32> to vector<8x1xf32>
    %7 = vector.broadcast %6 : vector<8x1xf32> to vector<8x4xf32>
    %8 = arith.subf %0, %7 : vector<8x4xf32>
    %9 = math.exp %8 : vector<8x4xf32>
    %cst_5 = arith.constant dense<0.000000e+00> : vector<8xf32>
    %10 = vector.multi_reduction <add>, %9, %cst_5 [1] : vector<8x4xf32> to vector<8xf32>
    %11 = vector.shape_cast %10 : vector<8xf32> to vector<8x1xf32>
    %12 = tpu.iota {dimensions = array<i32: 1>} : vector<1x4xi32>
    %13 = vector.broadcast %12 : vector<1x4xi32> to vector<8x4xi32>
    %14 = vector.broadcast %1 : vector<8x1xi32> to vector<8x4xi32>
    %15 = arith.cmpi eq, %13, %14 : vector<8x4xi32>
    %cst_6 = arith.constant 0.000000e+00 : f32
    %16 = vector.broadcast %cst_6 : f32 to vector<8x4xf32>
    %17 = arith.select %15, %8, %16 : vector<8x4xi1>, vector<8x4xf32>
    %cst_7 = arith.constant dense<0.000000e+00> : vector<8xf32>
    %18 = vector.multi_reduction <add>, %17, %cst_7 [1] : vector<8x4xf32> to vector<8xf32>
    %19 = vector.shape_cast %18 : vector<8xf32> to vector<8x1xf32>
    %20 = math.log %11 : vector<8x1xf32>
    %21 = arith.subf %19, %20 : vector<8x1xf32>
    %22 = math.exp %21 : vector<8x1xf32>
    %cst_8 = arith.constant 9.99999993E-9 : f32
    %23 = vector.broadcast %cst_8 : f32 to vector<8x1xf32>
    %24 = arith.addf %22, %23 : vector<8x1xf32>
    %25 = math.log %24 : vector<8x1xf32>
    %cst_9 = arith.constant 1.000000e+00 : f32
    %26 = vector.broadcast %cst_9 : f32 to vector<8x1xf32>
    %27 = arith.subf %26, %22 : vector<8x1xf32>
    %cst_10 = arith.constant 1.000000e-30 : f32
    %28 = vector.broadcast %cst_10 : f32 to vector<8x1xf32>
    %29 = arith.maximumf %27, %28 : vector<8x1xf32>
    %30 = math.log %29 : vector<8x1xf32>
    %31 = arith.mulf %4, %30 : vector<8x1xf32>
    %32 = math.exp %31 : vector<8x1xf32>
    %33 = arith.mulf %3, %32 : vector<8x1xf32>
    %cst_11 = arith.constant 0.000000e+00 : f32
    %34 = vector.broadcast %cst_11 : f32 to vector<8x1xf32>
    %35 = arith.subf %34, %33 : vector<8x1xf32>
    %36 = arith.mulf %35, %25 : vector<8x1xf32>
    %c8_i32 = arith.constant 8 : i32
    %37 = arith.muli %arg0, %c8_i32 : i32
    %38 = tpu.iota {dimensions = array<i32: 0>} : vector<8x1xi32>
    %39 = vector.broadcast %37 : i32 to vector<8x1xi32>
    %40 = arith.addi %39, %38 : vector<8x1xi32>
    %c8_i32_12 = arith.constant 8 : i32
    %41 = vector.broadcast %c8_i32_12 : i32 to vector<8x1xi32>
    %42 = arith.cmpi slt, %40, %41 : vector<8x1xi32>
    %cst_13 = arith.constant 0.000000e+00 : f32
    %43 = vector.broadcast %cst_13 : f32 to vector<8x1xf32>
    %44 = arith.select %42, %36, %43 : vector<8x1xi1>, vector<8x1xf32>
    %c0_14 = arith.constant 0 : index
    %c0_15 = arith.constant 0 : index
    %45 = vector.load %arg4[%c0_14, %c0_15] : memref<8x1xf32, #tpu.memory_space<vmem>>, vector<8x1xf32>
    tpu.vector_store %arg4[%c0_14, %c0_15], %44 {strides = array<i32>} : memref<8x1xf32, #tpu.memory_space<vmem>>, vector<8x1xf32>,
    return
  }
  func.func @transform_0(%arg0: i32) -> (i32, i32) {
    %c0_i32 = arith.constant 0 : i32
    %c0_i32_0 = arith.constant 0 : i32
    return %arg0, %c0_i32 : i32, i32
  }
  func.func @transform_1(%arg0: i32) -> (i32, i32) {
    %c0_i32 = arith.constant 0 : i32
    %c0_i32_0 = arith.constant 0 : i32
    return %arg0, %c0_i32 : i32, i32
  }
  func.func @transform_2(%arg0: i32) -> (i32, i32) {
    %c0_i32 = arith.constant 0 : i32
    %c0_i32_0 = arith.constant 0 : i32
    return %arg0, %c0_i32 : i32, i32
  }
  func.func @transform_3(%arg0: i32) -> (i32, i32) {
    %c0_i32 = arith.constant 0 : i32
    %c0_i32_0 = arith.constant 0 : i32
    return %arg0, %c0_i32 : i32, i32
  }
}

</mosaic_0001>

<bundles_post_ra>
// kernel: focal_loss.1
= control target key start
LH: loop header
LB: loop body
LE: loop exit
PB: predicated region body
PF: predicated region fallthrough
CT: control target
= control target key end

     0   :  { %vm17_vm0 = vcmask 31744   ;;  %v87_v1 = vmov 0   ;;  %v27_v7 = vlaneseq  ;;  %s88_s16 = smov 127   ;;  %vm66_vm2 = vcmask 7168   ;;  %s124_s0 = inlined_call_operand.vmem [shape: f32[8,4], index: 0, kind: input, shape index: {}]   ;;  %s125_s1 = inlined_call_operand.vmem [shape: s32[8,1], index: 1, kind: input, shape index: {}]   ;;  %s126_s2 = inlined_call_operand.vmem [shape: f32[8,2], index: 2, kind: input, shape index: {}]   ;;  %s127_s3 = inlined_call_operand.vmem [shape: f32[8,1], index: 3, kind: output, shape index: {}]  }
   0x1   :  { %v14_v0 = vld [vmem:[%s124_s0] sm:$0xff]  ;;  %74 = vset.pattern.permute.xlu0 %v87_v1 }
   0x2   :  { %v18_v2 = vsel %vm17_vm0, %v14_v0, -inf  ;;  %v15_v3 = vld [vmem:[%s125_s1] sm:$0xff]  ;;  %v28_v8 = vand.u32 127, %v27_v7 }
   0x3   :  { %19 = vmax.xlane.f32.xlu0 %v18_v2  ;;  %v16_v24 = vld [vmem:[%s126_s2] sm:$0xff] }
  0x19   :  { %30 = vperm.xlu0 %74, %v15_v3  }
  0x90   :  { %v20_v4 = vpop.xlane.xlu0 %19 }
  0x91   :  { %v21_v5 = vsub.f32 %v14_v0, %v20_v4 }
  0x93   :  { %v22_v6 = vmul.f32 1.442695, %v21_v5 }
  0x95   :  { %75 = vpow2.f32 %v22_v6 }
  0x98   :  { %v31_v9 = vpop.permute.xlu0 %30 }
  0x99   :  { %vm32_vm1 = vcmp.eq.s32.totalorder %v28_v8, %v31_v9 }
  0x9a   :  { %v33_v12 = vsel %vm32_vm1, %v21_v5, 0.0 }
  0x9b   :  { %v34_v13 = vsel %vm17_vm0, %v33_v12, 0.0 }
  0x9f   :  { %v76_v10 = vpop.eup %75 }
  0xa0   :  { %v24_v11 = vsel %vm17_vm0, %v76_v10, 0.0 }
  0xa1   :  { %25 = vadd.xlane.f32.xlu1 %v24_v11 }
  0xa5   :  { %35 = vadd.xlane.f32.xlu1 %v34_v13 }
 0x12e   :  { %v26_v14 = vpop.xlane.xlu1 %25 }
 0x12f   :  { %77 = vlog2.f32 %v26_v14 }
 0x132   :  { %v36_v17 = vpop.xlane.xlu1 %35 }
 0x139   :  { %v78_v15 = vpop.eup %77 }
 0x13a   :  { %v38_v16 = vmul.f32 0.6931472, %v78_v15 }
 0x13c   :  { %v39_v18 = vsub.f32 %v36_v17, %v38_v16 }
 0x13e   :  { %v40_v19 = vmul.f32 1.442695, %v39_v18 }
 0x140   :  { %79 = vpow2.f32 %v40_v19 }
 0x14a   :  { %v80_v20 = vpop.eup %79 }
 0x14b   :  { %v45_v21 = vsub.f32 1.0, %v80_v20  ;;  %v42_v29 = vadd.f32 1e-08, %v80_v20 }
 0x14d   :  { %v46_v22 = vmax.f32 %v45_v21, 1e-30 }
 0x14f   :  { %81 = vlog2.f32 %v46_v22 }
 0x159   :  { %v82_v23 = vpop.eup %81 }
 0x15a   :  { %v48_v25 = vmul.f32 0.6931472, %v82_v23 }
 0x15c   :  { %v49_v26 = vmul.f32 %v48_v25, %v16_v24 }
 0x15e   :  { %v50_v27 = vmul.f32 1.442695, %v49_v26 }
 0x160   :  { %83 = vpow2.f32 %v50_v27 }
 0x161   :  { %85 = vlog2.f32 %v42_v29 }
 0x16a   :  { %v84_v28 = vpop.eup %83 }
 0x16b   :  { %53 = vrot.lane.b32.xlu1 %v84_v28, %s88_s16  ;;  %v86_v30 = vpop.eup %85 }
 0x16c   :  { %v44_v33 = vmul.f32 0.6931472, %v86_v30 }
 0x1dd   :  { %v54_v31 = vpop.permute.xlu1 %53 }
 0x1de   :  { %v56_v32 = vmul.f32 %v54_v31, %v16_v24 }
 0x1e0   :  { %v57_v34 = vsub.f32 0.0, %v56_v32 }
 0x1e2   :  { %v58_v35 = vmul.f32 %v57_v34, %v44_v33 }
 0x1e4   :  { %67 = vst.msk [vmem:[%s127_s3] sm:$0xff] %vm66_vm2, %v58_v35 }

</bundles_post_ra>
